<compile_context>
chip_gen: v6e
topology: v6e:2x2x1
jax: 0.10.0
libtpu: 0.0.40
codegen_flags: <defaults>
</compile_context>

<pallas_src>
import math
from fractions import Fraction

import jax
import jax.numpy as jnp
from jax import lax
from jax.experimental import pallas as pl
from jax.experimental.pallas import tpu as pltpu


_MIN_TILE_BYTES = 1 * 1024 * 1024      # target per-block x DMA size
_VMEM_SLOP = 2 * 1024 * 1024           # output buffers + mosaic internal scratch


def _round_up(x, m):
    return ((x + m - 1) // m) * m


def _divisors_desc(n):
    return [d for d in range(n, 0, -1) if n % d == 0]


def _vmem_budget_bytes():
    """Generation-aware VMEM budget (v5e/v6e: 128 MiB physical, v7x: 64 MiB)."""
    cap = 64 * 1024 * 1024
    try:
        info = pltpu.get_tpu_info()
        cap = int(getattr(info, "vmem_capacity_bytes", cap) or cap)
    except Exception:
        pass
    return min(int(cap * 3 // 4), 100 * 1024 * 1024)


def _pick_tk(HW, tk_target):
    """Contraction tile (multiple of 128) and padded HW. Returns (TK, HW_pad)."""
    hw128 = _round_up(HW, 128)
    if hw128 <= tk_target:
        return hw128, hw128
    # Largest multiple-of-128 divisor of hw128 not exceeding tk_target.
    tk = 128
    for cand in range(tk_target, 127, -128):
        if hw128 % cand == 0:
            tk = cand
            break
    if tk < min(1024, tk_target):
        # Divisor too small -> accept some extra zero padding instead of tiny tiles.
        tk = tk_target
    return tk, _round_up(hw128, tk)


def _shrink_tk(tk, hw_pad):
    for cand in range(tk - 128, 127, -128):
        if hw_pad % cand == 0:
            return cand
    return 128


def _prefer_bt(feasible_desc, B, tile_bytes_of):
    """Prefer n_b >= 2 (v7x dual-TC) when the x tile stays >= 1 MiB."""
    if not feasible_desc:
        return None
    for bt in feasible_desc:
        if B // bt >= 2 and tile_bytes_of(bt) >= _MIN_TILE_BYTES:
            return bt
    return feasible_desc[0]


def _pick_bt_folded(B, C, TK, isz, ksz, per_batch_k, budget):
    """Batch tile for the small-C 'folded' path: rows R = Bt*C per block."""
    R_MAX, BT_MAX = 256, 32        # keep fused Gram memory-bound & epilogue small
    feasible = []
    for bt in _divisors_desc(B):
        if bt > BT_MAX:
            continue
        r = bt * C
        if r > R_MAX:
            continue
        if (r % 8 != 0) and (bt != B):       # (8,128) block rule on block rows
            continue
        x_b = 2 * r * TK * isz
        kb = bt if per_batch_k else 1
        k_b = 2 * kb * _round_up(C, 8) * _round_up(C, 128) * ksz
        acc_b = _round_up(r, 8) * _round_up(r, 128) * 4
        if x_b + k_b + acc_b + _VMEM_SLOP <= budget:
            feasible.append(bt)
    return _prefer_bt(feasible, B, lambda b_: b_ * C * TK * isz)


def _pick_bt_batched(B, C, TK, isz, ksz, per_batch_k, budget):
    """Batch tile for the batched (larger-C) path."""
    BT_MAX = 16
    c8 = _round_up(C, 8)
    cl = _round_up(C, 128)
    feasible = []
    for bt in _divisors_desc(B):
        if bt > BT_MAX:
            continue
        x_b = 2 * bt * c8 * TK * isz
        kb = bt if per_batch_k else 1
        k_b = 2 * kb * c8 * cl * ksz
        acc_b = bt * c8 * cl * 4
        if x_b + k_b + acc_b + _VMEM_SLOP <= budget:
            feasible.append(bt)
    return _prefer_bt(feasible, B, lambda b_: b_ * c8 * TK * isz)


def _make_folded_kernel(off, pwr, inv_comb, loss_weight, Bt, C, per_batch_k):
    off = float(off)
    pwr = int(pwr)
    inv_comb = float(inv_comb)
    inv_cc = float(loss_weight) / float(C * C)

    def kernel(x_ref, k_ref, o_ref, acc_ref):
        # x_ref : (Bt*C, TK)     folded feature tile (native dtype)
        # k_ref : (1|Bt, C, C)   target kernel matrix
        # o_ref : (Bt, 1, 1)     per-batch scalar loss
        # acc_ref: (Bt*C, Bt*C)  f32 fused block-Gram accumulator
        kk = pl.program_id(1)

        @pl.when(kk == 0)
        def _():
            acc_ref[...] = jnp.zeros_like(acc_ref)

        x = x_ref[...]
        # Fused (R, TK) @ (TK, R) Gram -- contract last axis of both operands,
        # no explicit transpose, f32 MXU accumulation.
        acc_ref[...] += lax.dot_general(
            x, x,
            dimension_numbers=(((1,), (1,)), ((), ())),
            preferred_element_type=jnp.float32,
        )

        @pl.when(kk == pl.num_programs(1) - 1)
        def _():
            # Only the Bt diagonal (C, C) blocks of the fused Gram are needed.
            for i in range(Bt):
                blk = acc_ref[pl.ds(i * C, C), pl.ds(i * C, C)]
                g = ((blk + off) ** pwr) * inv_comb
                ki = k_ref[i if per_batch_k else 0].astype(jnp.float32)
                d = g - ki
                o_ref[i] = jnp.sum(d * d, keepdims=True) * inv_cc

    return kernel


def _make_batched_kernel(off, pwr, inv_comb, loss_weight):
    off = float(off)
    pwr = int(pwr)
    inv_comb = float(inv_comb)
    lw = float(loss_weight)

    def kernel(x_ref, k_ref, o_ref, acc_ref):
        # x_ref : (Bt, C, TK), k_ref: (1|Bt, C, C), o_ref: (Bt, 1, 1)
        # acc_ref: (Bt, C, C) f32 Gram accumulator (persists across K axis)
        kk = pl.program_id(1)

        @pl.when(kk == 0)
        def _():
            acc_ref[...] = jnp.zeros_like(acc_ref)

        x = x_ref[...]
        acc_ref[...] += lax.dot_general(
            x, x,
            dimension_numbers=(((2,), (2,)), ((0,), (0,))),
            preferred_element_type=jnp.float32,
        )

        @pl.when(kk == pl.num_programs(1) - 1)
        def _():
            g = ((acc_ref[...] + off) ** pwr) * inv_comb
            diff = g - k_ref[...].astype(jnp.float32)
            per_batch = lw * jnp.mean(diff * diff, axis=(1, 2))
            o_ref[...] = per_batch.reshape(o_ref.shape)

    return kernel


def kernel_loss_batch(inp, kernel_comp, *, off=0.0, pwr=1, loss_weight=1.0,
                      tk_target=8192, compute_dtype=None):
    """Returns (inp, loss); loss has shape (B,) == torch mean over dims (1, 2)."""
    B, C, H, W = inp.shape
    HW = H * W
    comb_val = math.comb(HW, int(pwr))           # exact (scipy.special.comb(c*d, pwr))
    # Fraction avoids float overflow of huge comb values (pwr>=3, large HW).
    inv_comb = float("inf") if comb_val == 0 else float(Fraction(1, comb_val))

    x = inp.reshape(B, C, HW)
    if compute_dtype is not None:
        x = x.astype(compute_dtype)              # optional bf16: halves HBM traffic
    isz = jnp.dtype(x.dtype).itemsize

    # kernel_comp: shared (C, C) or per-batch (B, C, C) (expand_as semantics).
    if kernel_comp.ndim == 2:
        k3 = kernel_comp[None]
        per_batch_k = False
    else:
        k3 = kernel_comp
        per_batch_k = True
    ksz = jnp.dtype(k3.dtype).itemsize

    # TODO(synk): the `corr` / `corrTens` normalization branch (corr != 0) and
    # non-'mse' loss_type of the module are not implemented (default path only).

    budget = _vmem_budget_bytes()
    tk_target = max(128, _round_up(int(tk_target), 128))
    TK, HW_pad = _pick_tk(HW, tk_target)

    # --- choose path + batch tile under a total-VMEM budget ---
    use_folded = C <= 16
    Bt = None
    if use_folded:
        Bt = _pick_bt_folded(B, C, TK, isz, ksz, per_batch_k, budget)
        while Bt is None and TK > 128:
            TK = _shrink_tk(TK, HW_pad)
            Bt = _pick_bt_folded(B, C, TK, isz, ksz, per_batch_k, budget)
        if Bt is None:
            use_folded = False
    if not use_folded:
        Bt = _pick_bt_batched(B, C, TK, isz, ksz, per_batch_k, budget)
        while Bt is None and TK > 128:
            TK = _shrink_tk(TK, HW_pad)
            Bt = _pick_bt_batched(B, C, TK, isz, ksz, per_batch_k, budget)
        if Bt is None:
            Bt = 1   # TODO(synk): extremely large C may still exceed the VMEM budget.

    # Zero-pad HW to the tile boundary (zeros leave X.X^T unchanged; off/pwr
    # are applied after the contraction, so this is exact).
    if HW_pad != HW:
        x = jnp.pad(x, ((0, 0), (0, 0), (0, HW_pad - HW)))

    n_b = B // Bt
    n_k = HW_pad // TK

    if per_batch_k:
        k_spec = pl.BlockSpec((Bt, C, C), lambda b, kk: (b, 0, 0))
    else:
        k_spec = pl.BlockSpec((1, C, C), lambda b, kk: (0, 0, 0))

    if use_folded:
        R = Bt * C
        x = x.reshape(B * C, HW_pad)
        in_specs = [pl.BlockSpec((R, TK), lambda b, kk: (b, kk)), k_spec]
        scratch = [pltpu.VMEM((R, R), jnp.float32)]
        kern = _make_folded_kernel(off, pwr, inv_comb, loss_weight, Bt, C, per_batch_k)
        flops = 2 * B * C * R * HW_pad
    else:
        in_specs = [pl.BlockSpec((Bt, C, TK), lambda b, kk: (b, 0, kk)), k_spec]
        scratch = [pltpu.VMEM((Bt, C, C), jnp.float32)]
        kern = _make_batched_kernel(off, pwr, inv_comb, loss_weight)
        flops = 2 * B * C * C * HW_pad

    k_total_bytes = (B if per_batch_k else 1) * C * C * ksz
    cost = pl.CostEstimate(
        flops=int(flops),
        transcendentals=0,
        bytes_accessed=int(B * C * HW_pad * isz + k_total_bytes + B * 4),
    )

    loss = pl.pallas_call(
        kern,
        out_shape=jax.ShapeDtypeStruct((B, 1, 1), jnp.float32),
        grid_spec=pltpu.PrefetchScalarGridSpec(
            num_scalar_prefetch=0,
            grid=(n_b, n_k),
            in_specs=in_specs,
            out_specs=pl.BlockSpec((Bt, 1, 1), lambda b, kk: (b, 0, 0)),
            scratch_shapes=scratch,
        ),
        compiler_params=pltpu.CompilerParams(
            dimension_semantics=("parallel", "arbitrary"),
            vmem_limit_bytes=int(budget),
        ),
        cost_estimate=cost,
    )(x, k3)

    return inp, loss.reshape(B)


def _reference(inp, kernel_comp, *, off, pwr, loss_weight):
    B, C, H, W = inp.shape
    HW = H * W
    x = inp.reshape(B, C, HW).astype(jnp.float32)
    g = jnp.einsum("bcp,bdp->bcd", x, x)
    g = ((g + off) ** int(pwr)) / math.comb(HW, int(pwr))
    kc = kernel_comp if kernel_comp.ndim == 3 else kernel_comp[None]
    diff = g - kc.astype(jnp.float32)
    loss = loss_weight * (diff ** 2)
    return jnp.mean(loss, axis=(1, 2))


if __name__ == "__main__":
    key = jax.random.PRNGKey(0)
    ks = jax.random.split(key, 6)

    # --- Test 1: small spatial, shared kernel_comp (folded small-C path) ---
    B, C, H, W = 2, 4, 16, 16
    inp = jax.random.normal(ks[0], (B, C, H, W), dtype=jnp.float32)
    kc = jax.random.normal(ks[1], (C, C), dtype=jnp.float32)
    out_inp, loss = kernel_loss_batch(inp, kc, off=1.0, pwr=2, loss_weight=0.5)
    loss = jax.block_until_ready(loss)
    out_inp = jax.block_until_ready(out_inp)
    ref = _reference(inp, kc, off=1.0, pwr=2, loss_weight=0.5)
    assert out_inp.shape == inp.shape
    assert loss.shape == (B,)
    assert jnp.allclose(loss, ref, rtol=1e-4, atol=1e-5), (loss, ref)

    # --- Test 2: per-batch kernel_comp, K-tiled Gram accumulation (4 K steps) ---
    B2, C2, H2, W2 = 2, 4, 32, 32
    inp2 = jax.random.normal(ks[2], (B2, C2, H2, W2), dtype=jnp.float32)
    kc2 = jax.random.normal(ks[3], (B2, C2, C2), dtype=jnp.float32)
    _, loss2 = kernel_loss_batch(inp2, kc2, off=0.5, pwr=1, loss_weight=2.0,
                                 tk_target=256)
    loss2 = jax.block_until_ready(loss2)
    ref2 = _reference(inp2, kc2, off=0.5, pwr=1, loss_weight=2.0)
    assert loss2.shape == (B2,)
    assert jnp.allclose(loss2, ref2, rtol=1e-4, atol=1e-5), (loss2, ref2)

    # --- Test 3: larger C (batched path) + non-128-aligned HW (zero padding) ---
    B3, C3, H3, W3 = 2, 32, 10, 10
    inp3 = jax.random.normal(ks[4], (B3, C3, H3, W3), dtype=jnp.float32)
    kc3 = jax.random.normal(ks[5], (C3, C3), dtype=jnp.float32)
    _, loss3 = kernel_loss_batch(inp3, kc3, off=0.0, pwr=1, loss_weight=1.0)
    loss3 = jax.block_until_ready(loss3)
    ref3 = _reference(inp3, kc3, off=0.0, pwr=1, loss_weight=1.0)
    assert loss3.shape == (B3,)
    assert jnp.allclose(loss3, ref3, rtol=1e-4, atol=1e-5), (loss3, ref3)

    print("KERNEL_OK")
</pallas_src>

<mosaic_0001>
module attributes {stable_mosaic.version = 11 : i64} {
  func.func @kernel(%arg0: i32, %arg1: i32, %arg2: memref<8x256xf32, #tpu.memory_space<vmem>>, %arg3: memref<1x4x4xf32, #tpu.memory_space<vmem>>, %arg4: memref<2x1x1xf32, #tpu.memory_space<vmem>>, %arg5: memref<8x8xf32, #tpu.memory_space<vmem>>) attributes {dimension_semantics = [#tpu.dimension_semantics<parallel>, #tpu.dimension_semantics<arbitrary>], iteration_bounds = array<i64: 1, 1>, scalar_prefetch = 0 : i64, scratch_operands = 1 : i64, tpu.core_type = #tpu.core_type<tc>, window_params = [{transform_indices = @transform_0, window_bounds = array<i64: 8, 256>}, {pipeline_mode = #tpu.pipeline_mode<synchronous>, transform_indices = @transform_1, window_bounds = array<i64: 1, 4, 4>}, {transform_indices = @transform_2, window_bounds = array<i64: 2, 1, 1>}]} {
    %c0_i32 = arith.constant 0 : i32
    %0 = arith.cmpi eq, %arg1, %c0_i32 : i32
    %1 = arith.extui %0 : i1 to i32
    %c0_i32_0 = arith.constant 0 : i32
    %2 = arith.cmpi ne, %1, %c0_i32_0 : i32
    scf.if %2 {
      %cst_8 = arith.constant 0.000000e+00 : f32
      %11 = vector.broadcast %cst_8 : f32 to vector<8x8xf32>
      %c0_9 = arith.constant 0 : index
      %c0_10 = arith.constant 0 : index
      %12 = vector.load %arg5[%c0_9, %c0_10] : memref<8x8xf32, #tpu.memory_space<vmem>>, vector<8x8xf32>
      tpu.vector_store %arg5[%c0_9, %c0_10], %11 {strides = array<i32>} : memref<8x8xf32, #tpu.memory_space<vmem>>, vector<8x8xf32>,
    } else {
    }
    %c0 = arith.constant 0 : index
    %c0_1 = arith.constant 0 : index
    %3 = vector.load %arg2[%c0, %c0_1] : memref<8x256xf32, #tpu.memory_space<vmem>>, vector<8x256xf32>
    %c0_2 = arith.constant 0 : index
    %c0_3 = arith.constant 0 : index
    %4 = vector.load %arg5[%c0_2, %c0_3] : memref<8x8xf32, #tpu.memory_space<vmem>>, vector<8x8xf32>
    %cst = arith.constant dense<0.000000e+00> : vector<8x8xf32>
    %5 = tpu.matmul %3, %3, %cst {dimension_numbers = #tpu.dot_dimension_numbers<[1], [1], [0], [0], [0, 0, 1, 0], [], []>} : vector<8x256xf32>, vector<8x256xf32>, vector<8x8xf32> -> vector<8x8xf32>
    %6 = arith.addf %4, %5 : vector<8x8xf32>
    %c0_4 = arith.constant 0 : index
    %c0_5 = arith.constant 0 : index
    %7 = vector.load %arg5[%c0_4, %c0_5] : memref<8x8xf32, #tpu.memory_space<vmem>>, vector<8x8xf32>
    tpu.vector_store %arg5[%c0_4, %c0_5], %6 {strides = array<i32>} : memref<8x8xf32, #tpu.memory_space<vmem>>, vector<8x8xf32>,
    %c0_i32_6 = arith.constant 0 : i32
    %8 = arith.cmpi eq, %arg1, %c0_i32_6 : i32
    %9 = arith.extui %8 : i1 to i32
    %c0_i32_7 = arith.constant 0 : i32
    %10 = arith.cmpi ne, %9, %c0_i32_7 : i32
    scf.if %10 {
      %c0_8 = arith.constant 0 : index
      %c0_9 = arith.constant 0 : index
      %11 = vector.load %arg5[%c0_8, %c0_9] : memref<8x8xf32, #tpu.memory_space<vmem>>, vector<4x4xf32>
      %cst_10 = arith.constant 1.000000e+00 : f32
      %12 = vector.broadcast %cst_10 : f32 to vector<4x4xf32>
      %13 = arith.addf %11, %12 : vector<4x4xf32>
      %14 = arith.mulf %13, %13 : vector<4x4xf32>
      %cst_11 = arith.constant 3.06372567E-5 : f32
      %15 = vector.broadcast %cst_11 : f32 to vector<4x4xf32>
      %16 = arith.mulf %14, %15 : vector<4x4xf32>
      %c0_12 = arith.constant 0 : index
      %c0_13 = arith.constant 0 : index
      %c0_14 = arith.constant 0 : index
      %17 = vector.load %arg3[%c0_12, %c0_13, %c0_14] : memref<1x4x4xf32, #tpu.memory_space<vmem>>, vector<1x4x4xf32>
      %18 = vector.shape_cast %17 : vector<1x4x4xf32> to vector<4x4xf32>
      %19 = arith.subf %16, %18 : vector<4x4xf32>
      %20 = arith.mulf %19, %19 : vector<4x4xf32>
      %21 = vector.shape_cast %20 : vector<4x4xf32> to vector<1x4x4xf32>
      %cst_15 = arith.constant dense<0.000000e+00> : vector<1xf32>
      %22 = vector.multi_reduction <add>, %21, %cst_15 [1, 2] : vector<1x4x4xf32> to vector<1xf32>
      %23 = vector.shape_cast %22 : vector<1xf32> to vector<1x1x1xf32>
      %24 = vector.extract %23[0, 0, 0] : f32 from vector<1x1x1xf32>
      %25 = vector.broadcast %24 : f32 to vector<1x1xf32>
      %cst_16 = arith.constant 3.125000e-02 : f32
      %26 = vector.broadcast %cst_16 : f32 to vector<1x1xf32>
      %27 = arith.mulf %25, %26 : vector<1x1xf32>
      %c0_17 = arith.constant 0 : index
      %c0_18 = arith.constant 0 : index
      %c0_19 = arith.constant 0 : index
      %28 = vector.load %arg4[%c0_17, %c0_18, %c0_19] : memref<2x1x1xf32, #tpu.memory_space<vmem>>, vector<1x1x1xf32>
      %29 = vector.shape_cast %28 : vector<1x1x1xf32> to vector<1x1xf32>
      %30 = vector.shape_cast %27 : vector<1x1xf32> to vector<1x1x1xf32>
      tpu.vector_store %arg4[%c0_17, %c0_18, %c0_19], %30 {strides = array<i32>} : memref<2x1x1xf32, #tpu.memory_space<vmem>>, vector<1x1x1xf32>,
      %c4 = arith.constant 4 : index
      %c4_20 = arith.constant 4 : index
      %31 = vector.load %arg5[%c4, %c4_20] : memref<8x8xf32, #tpu.memory_space<vmem>>, vector<4x4xf32>
      %cst_21 = arith.constant 1.000000e+00 : f32
      %32 = vector.broadcast %cst_21 : f32 to vector<4x4xf32>
      %33 = arith.addf %31, %32 : vector<4x4xf32>
      %34 = arith.mulf %33, %33 : vector<4x4xf32>
      %cst_22 = arith.constant 3.06372567E-5 : f32
      %35 = vector.broadcast %cst_22 : f32 to vector<4x4xf32>
      %36 = arith.mulf %34, %35 : vector<4x4xf32>
      %c0_23 = arith.constant 0 : index
      %c0_24 = arith.constant 0 : index
      %c0_25 = arith.constant 0 : index
      %37 = vector.load %arg3[%c0_23, %c0_24, %c0_25] : memref<1x4x4xf32, #tpu.memory_space<vmem>>, vector<1x4x4xf32>
      %38 = vector.shape_cast %37 : vector<1x4x4xf32> to vector<4x4xf32>
      %39 = arith.subf %36, %38 : vector<4x4xf32>
      %40 = arith.mulf %39, %39 : vector<4x4xf32>
      %41 = vector.shape_cast %40 : vector<4x4xf32> to vector<1x4x4xf32>
      %cst_26 = arith.constant dense<0.000000e+00> : vector<1xf32>
      %42 = vector.multi_reduction <add>, %41, %cst_26 [1, 2] : vector<1x4x4xf32> to vector<1xf32>
      %43 = vector.shape_cast %42 : vector<1xf32> to vector<1x1x1xf32>
      %44 = vector.extract %43[0, 0, 0] : f32 from vector<1x1x1xf32>
      %45 = vector.broadcast %44 : f32 to vector<1x1xf32>
      %cst_27 = arith.constant 3.125000e-02 : f32
      %46 = vector.broadcast %cst_27 : f32 to vector<1x1xf32>
      %47 = arith.mulf %45, %46 : vector<1x1xf32>
      %c1 = arith.constant 1 : index
      %c0_28 = arith.constant 0 : index
      %c0_29 = arith.constant 0 : index
      %48 = vector.load %arg4[%c1, %c0_28, %c0_29] : memref<2x1x1xf32, #tpu.memory_space<vmem>>, vector<1x1x1xf32>
      %49 = vector.shape_cast %48 : vector<1x1x1xf32> to vector<1x1xf32>
      %50 = vector.shape_cast %47 : vector<1x1xf32> to vector<1x1x1xf32>
      tpu.vector_store %arg4[%c1, %c0_28, %c0_29], %50 {strides = array<i32>} : memref<2x1x1xf32, #tpu.memory_space<vmem>>, vector<1x1x1xf32>,
    } else {
    }
    return
  }
  func.func @transform_0(%arg0: i32, %arg1: i32) -> (i32, i32) {
    %c0_i32 = arith.constant 0 : i32
    return %arg0, %arg1 : i32, i32
  }
  func.func @transform_1(%arg0: i32, %arg1: i32) -> (i32, i32, i32) {
    %c0_i32 = arith.constant 0 : i32
    %c0_i32_0 = arith.constant 0 : i32
    %c0_i32_1 = arith.constant 0 : i32
    %c0_i32_2 = arith.constant 0 : i32
    return %c0_i32, %c0_i32_0, %c0_i32_1 : i32, i32, i32
  }
  func.func @transform_2(%arg0: i32, %arg1: i32) -> (i32, i32, i32) {
    %c0_i32 = arith.constant 0 : i32
    %c0_i32_0 = arith.constant 0 : i32
    %c0_i32_1 = arith.constant 0 : i32
    return %arg0, %c0_i32, %c0_i32_0 : i32, i32, i32
  }
}

</mosaic_0001>

<bundles_post_ra>
// kernel: tpu_custom_call.1
= control target key start
LH: loop header
LB: loop body
LE: loop exit
PB: predicated region body
PF: predicated region fallthrough
CT: control target
= control target key end

     0   :  { %7 = vsyncpa [#allocation4], 0  ;;  %s265_s0 = inlined_call_operand.hbm [shape: f32[8,256], index: 0, kind: input, shape index: {}]   ;;  %s266_s1 = inlined_call_operand.hbm [shape: f32[1,4,4], index: 1, kind: input, shape index: {}]   ;;  %s267_s2 = inlined_call_operand.vmem [shape: f32[2,1,1], index: 2, kind: output, shape index: {}]  }
   0x1   :  { %8 = vsyncpa [#allocation6], 0  ;;  %s231_s9 = smov [#allocation3]   ;;  %s232_s11 = smov [#allocation5]  }
   0x2   :  { %s15_s10 = sshll.u32 %s231_s9, 4  ;;  %s25_s12 = sshll.u32 %s232_s11, 4  ;;  %s16_s10 = int_to_ptr.vmem [resolvable:$true] %s15_s10  ;;  %s26_s12 = int_to_ptr.vmem [resolvable:$true] %s25_s12 }
   0x3   :  { %s195_s13 = scalar_lea.vmem %s16_s10, 256  ;;  %p200_p1 = scmp.lt.s32.totalorder %s16_s10, %s16_s10 }
   0x4   :  { %p196_p0 = scmp.ne.s32.totalorder %s16_s10, %s195_s13  ;;  %p201_p2 = scmp.lt.s32.totalorder %s195_s13, %s195_s13 }
   0x6   :  { %p202_p3 = por %p201_p2, %p200_p1 }
   0x8   :  { %p203_p4 = pnand %p202_p3, %p196_p0 }
   0xa   :  { %206 = shalt.err (!%p203_p4)
}
   0xb   :  { %18 = dma.hbm_to_vmem [thread:$0]  %s265_s0, 256, %s16_s10, [#allocation4]  }
   0xc   :  { %s215_s16 = scalar_lea.vmem %s26_s12, 64  ;;  %p220_p6 = scmp.lt.s32.totalorder %s26_s12, %s26_s12 }
   0xd   :  { %p216_p5 = scmp.ne.s32.totalorder %s26_s12, %s215_s16  ;;  %p221_p7 = scmp.lt.s32.totalorder %s215_s16, %s215_s16 }
   0xf   :  { %p222_p8 = por %p221_p7, %p220_p6 }
  0x11   :  { %p223_p9 = pnand %p222_p8, %p216_p5 }
  0x13   :  { %226 = shalt.err (!%p223_p9)
}
  0x14   :  { %28 = dma.hbm_to_vmem [thread:$0]  %s266_s1, 64, %s26_s12, [#allocation6]  }
  0x15   :  { %227 = dma.done.wait [#allocation4], 256  }
  0x16   :  { %228 = vsyncadd [#allocation4], 4294967040 }
  0x17   :  { %229 = dma.done.wait [#allocation6], 64  }
  0x18   :  { %230 = vsyncadd [#allocation6], 4294967232  ;;  %vm39_vm0 = vcmask 64512   ;;  %v233_v0 = vmov 0.0   ;;  %v42_v1 = vld [vmem:[#allocation3 + $0x8] sm:$0xff]  ;;  %v41_v2 = vld [vmem:[#allocation3] sm:$0xff] }
  0x19   :  { %40 = vst.msk [vmem:[#allocation2] sm:$0xff] %vm39_vm0, %v233_v0  ;;  %v146_v3 = vld [vmem:[#allocation5] sm:$0xf]  ;;  %74 = vmatprep.subr.mxu0 %v42_v1  ;;  %108 = vmatprep.mubr.f32.mxu0 %v42_v1  ;;  %s234_s0 = smov 4   ;;  %vm127_vm1 = vcmask 27648   ;;  %s235_s1 = smov 124  }
  0x1a   :  { %75 = vmatpush1.xpose.msra.mxu0 %v41_v2  ;;  %148 = vrot.lane.b32.xlu0 %v146_v3, %s234_s0  ;;  %v124_v15 = vld [vmem:[#allocation5] sm:$0xf]  ;;  %vm140_vm2 = vcmask 0  }
  0x1d   :  { %109 = vmatmul.mubr.f32.vlgmr.msra.gmra.mxu0 %v41_v2 }
  0x20   :  { %v43_v4 = vld [vmem:[#allocation2] sm:$0xff] }
  0x8c   :  { %v149_v14 = vpop.permute.xlu0 %148 }
  0xdd   :  { %v110_v5 = vpop.f32.mrf.mxu0 }
  0xde   :  { %v114_v6 = vadd.f32 %v110_v5, %v43_v4 }
  0xdf   :  { %v112_v7 = vpop.f32.mrf.mxu0 }
  0xe0   :  { %116 = vst.msk [vmem:[#allocation2] sm:$0xff] %vm39_vm0, %v114_v6 }
  0xe7   :  { %v142_v8 = vld [vmem:[#allocation2 + $0x4] sm:$0xf]  ;;  %v120_v9 = vld [vmem:[#allocation2] sm:$0xf] }
  0xe8   :  { %v143_v10 = vadd.f32 1.0, %v142_v8  ;;  %v121_v11 = vadd.f32 1.0, %v120_v9 }
  0xea   :  { %v144_v12 = vmul.f32 %v143_v10, %v143_v10  ;;  %v122_v13 = vmul.f32 %v121_v11, %v121_v11 }
  0xec   :  { %v145_v16 = vmul.f32 3.0637257e-05, %v144_v12  ;;  %v123_v17 = vmul.f32 3.0637257e-05, %v122_v13 }
  0xee   :  { %v151_v18 = vsub.f32 %v145_v16, %v149_v14  ;;  %v125_v19 = vsub.f32 %v123_v17, %v124_v15 }
  0xf0   :  { %v152_v20 = vmul.f32 %v151_v18, %v151_v18  ;;  %v126_v21 = vmul.f32 %v125_v19, %v125_v19 }
  0xf2   :  { %154 = vrot.lane.b32.xlu0 %v152_v20, %s235_s1  ;;  %v128_v22 = vsel %vm127_vm1, %v126_v21, 0.0 }
  0xf3   :  { %129 = vadd.xlane.f32.xlu1 %v128_v22 }
 0x164   :  { %v155_v23 = vpop.permute.xlu0 %154 }
 0x165   :  { %v157_v24 = vsel %vm127_vm1, %v155_v23, 0.0 }
 0x166   :  { %158 = vadd.xlane.f32.xlu1 %v157_v24 }
 0x17c   :  { %v130_v25 = vpop.xlane.xlu1 %129 }
 0x17d   :  { %v131_v26 = vrot.slane %v130_v25, 4 }
 0x17f   :  { %v132_v27 = vadd.f32 %v131_v26, %v130_v25 }
 0x181   :  { %v133_v28 = vrot.slane %v132_v27, 2 }
 0x183   :  { %v134_v29 = vadd.f32 %v133_v28, %v132_v27 }
 0x185   :  { %v135_v30 = vrot.slane %v134_v29, 1 }
 0x187   :  { %v136_v31 = vadd.f32 %v135_v30, %v134_v29 }
 0x189   :  { %178 = vpush %v136_v31 }
 0x1ba   :  { %s179_s19 = spop %178 }
 0x1bb   :  { %v138_v32 = vstv %s179_s19 }
 0x1bc   :  { %v139_v33 = vmul.f32 0.03125, %v138_v32 }
 0x1be   :  { %141 = vst.msk [vmem:[%s267_s2] sm:$0x1] %vm140_vm2, %v139_v33 }
 0x1ef   :  { %v159_v34 = vpop.xlane.xlu1 %158 }
 0x1f0   :  { %v160_v35 = vrot.slane %v159_v34, 4 }
 0x1f2   :  { %v161_v36 = vadd.f32 %v160_v35, %v159_v34 }
 0x1f4   :  { %v162_v37 = vrot.slane %v161_v36, 2 }
 0x1f6   :  { %v163_v38 = vadd.f32 %v162_v37, %v161_v36 }
 0x1f8   :  { %v164_v39 = vrot.slane %v163_v38, 1 }
 0x1fa   :  { %v165_v40 = vadd.f32 %v164_v39, %v163_v38 }
 0x1fc   :  { %180 = vpush %v165_v40 }
 0x22d   :  { %s181_s22 = spop %180 }
 0x22e   :  { %v167_v41 = vstv %s181_s22 }
 0x22f   :  { %v168_v42 = vmul.f32 0.03125, %v167_v41 }
 0x231   :  { %177 = vst.msk [vmem:[%s267_s2 + $0x1] sm:$0x1] %vm140_vm2, %v168_v42 }
 0x232   :  { %175 = vsyncpa [#allocation4], 1 }
 0x233   :  { %176 = vsyncpa [#allocation6], 1 }

</bundles_post_ra>
